<compile_context>
chip_gen: v5e
topology: v5e:2x2
jax: 0.10.0
libtpu: 0.0.40
codegen_flags: <defaults>
</compile_context>

<pallas_src>
import functools

import jax
import jax.numpy as jnp
from jax import lax
from jax.experimental import pallas as pl
from jax.experimental.pallas import tpu as pltpu


def _round_up(n, m):
    return (n + m - 1) // m * m


# ----------------------------------------------------------------------------
# Fused kernel: for each layer
#   seq <- seq @ W_ih^T + (b_ih + b_hh)        (one big MXU matmul, hoisted)
#   for t in range(T):  h <- tanh(seq[t] + h @ W_hh^T);  seq[t] <- h
# then  out <- seq @ W_fc^T + b_fc             (fused FC epilogue)
# `seq` is a VMEM scratch of shape (T*B_pad, H_pad) reused in place.
# ----------------------------------------------------------------------------
def _make_fused_kernel(n_layer, T, B_pad, H_pad):
    def kernel(*refs):
        x_ref = refs[0]                                   # (T*B_pad, D_pad)
        layer_refs = refs[1:1 + 3 * n_layer]              # (wih_t, whh_t, bias) x L
        wfc_ref = refs[1 + 3 * n_layer]                   # (H_pad, O_pad)
        bfc_ref = refs[2 + 3 * n_layer]                   # (1, O_pad)
        out_ref = refs[3 + 3 * n_layer]                   # (T*B_pad, O_pad)
        seq_ref = refs[4 + 3 * n_layer]                   # VMEM scratch (T*B_pad, H_pad)

        for layer in range(n_layer):
            wih_ref = layer_refs[3 * layer + 0]
            whh_ref = layer_refs[3 * layer + 1]
            b_ref = layer_refs[3 * layer + 2]

            # Hoisted input projection + bias: one lane-dense MXU matmul over
            # all time steps (bias broadcast applied once, not per step).
            src = x_ref[...] if layer == 0 else seq_ref[...]
            seq_ref[...] = (
                jnp.dot(src, wih_ref[...], preferred_element_type=jnp.float32)
                + b_ref[...]
            )

            whh = whh_ref[...]  # hold W_hh^T in vregs across the time loop

            def step(t, h_prev):
                start = pl.multiple_of(t * B_pad, B_pad)
                pre = seq_ref[pl.ds(start, B_pad), :] + jnp.dot(
                    h_prev, whh, preferred_element_type=jnp.float32
                )
                h_new = jnp.tanh(pre)
                seq_ref[pl.ds(start, B_pad), :] = h_new
                return h_new

            h0 = jnp.zeros((B_pad, H_pad), jnp.float32)
            lax.fori_loop(0, T, step, h0, unroll=True)

        # Fused FC head on the VMEM-resident hidden slab (O padded to 128 ->
        # unmasked lane-dense stores).
        out_ref[...] = (
            jnp.dot(seq_ref[...], wfc_ref[...], preferred_element_type=jnp.float32)
            + bfc_ref[...]
        ).astype(out_ref.dtype)

    return kernel


# ----------------------------------------------------------------------------
# One-time weight preparation: transpose to (in, out) layout, cast to f32,
# zero-pad to lane/sublane-friendly shapes.
# ----------------------------------------------------------------------------
def prepare_params(params, input_size, n_hidden, n_layer, output_size):
    D_pad = _round_up(input_size, 128)
    H_pad = _round_up(n_hidden, 128)
    O_pad = _round_up(output_size, 128)

    layers = []
    for layer in range(n_layer):
        w_ih, w_hh, b_ih, b_hh = params["rnn"][layer]
        d_in = input_size if layer == 0 else n_hidden
        d_pad = D_pad if layer == 0 else H_pad
        wih_t = (
            jnp.zeros((d_pad, H_pad), jnp.float32)
            .at[:d_in, :n_hidden].set(jnp.transpose(w_ih).astype(jnp.float32))
        )
        whh_t = (
            jnp.zeros((H_pad, H_pad), jnp.float32)
            .at[:n_hidden, :n_hidden].set(jnp.transpose(w_hh).astype(jnp.float32))
        )
        bias = (
            jnp.zeros((1, H_pad), jnp.float32)
            .at[0, :n_hidden].set((b_ih + b_hh).astype(jnp.float32))
        )
        layers.append((wih_t, whh_t, bias))

    wfc_t = (
        jnp.zeros((H_pad, O_pad), jnp.float32)
        .at[:n_hidden, :output_size].set(
            jnp.transpose(params["fc_w"]).astype(jnp.float32))
    )
    bfc = (
        jnp.zeros((1, O_pad), jnp.float32)
        .at[0, :output_size].set(params["fc_b"].astype(jnp.float32))
    )
    return {"layers": layers, "fc_w_t": wfc_t, "fc_b": bfc}


# ----------------------------------------------------------------------------
# Full module forward: batch_first multi-layer RNN + fc, one pallas_call.
# ----------------------------------------------------------------------------
@functools.partial(jax.jit, static_argnames=("output_size",))
def rnn_model_forward(x, prepped, output_size):
    # x: (B, T, input_size) -> (B, T, output_size)
    B, T, D = x.shape
    B_pad = _round_up(B, 8)

    layers = prepped["layers"]
    n_layer = len(layers)
    D_pad = layers[0][0].shape[0]
    H_pad = prepped["fc_w_t"].shape[0]
    O_pad = prepped["fc_w_t"].shape[1]

    # (B, T, D) -> zero-padded, time-major, flattened (T*B_pad, D_pad)
    x_tbd = jnp.transpose(x, (1, 0, 2)).astype(jnp.float32)
    x_flat = (
        jnp.zeros((T, B_pad, D_pad), jnp.float32)
        .at[:, :B, :D].set(x_tbd)
        .reshape(T * B_pad, D_pad)
    )

    args = [x_flat]
    for wih_t, whh_t, bias in layers:
        args += [wih_t, whh_t, bias]
    args += [prepped["fc_w_t"], prepped["fc_b"]]

    out_flat = pl.pallas_call(
        _make_fused_kernel(n_layer, T, B_pad, H_pad),
        out_shape=jax.ShapeDtypeStruct((T * B_pad, O_pad), jnp.float32),
        scratch_shapes=[pltpu.VMEM((T * B_pad, H_pad), jnp.float32)],
    )(*args)

    out = out_flat.reshape(T, B_pad, O_pad)[:, :B, :output_size]
    return jnp.transpose(out, (1, 0, 2))  # (B, T, output_size)


# ----------------------------------------------------------------------------
# Pure-JAX reference for correctness checking (unpadded, PyTorch semantics).
# ----------------------------------------------------------------------------
def rnn_model_reference(x, params, n_layer):
    B, T, _ = x.shape
    h_seq = x
    for layer in range(n_layer):
        w_ih, w_hh, b_ih, b_hh = params["rnn"][layer]
        H = w_ih.shape[0]
        h = jnp.zeros((B, H), jnp.float32)
        outs = []
        for t in range(T):
            h = jnp.tanh(h_seq[:, t, :] @ w_ih.T + b_ih + h @ w_hh.T + b_hh)
            outs.append(h)
        h_seq = jnp.stack(outs, axis=1)
    return h_seq @ params["fc_w"].T + params["fc_b"]


def init_params(key, input_size, n_hidden, n_layer, output_size):
    """Deterministic init mimicking PyTorch's U(-1/sqrt(H), 1/sqrt(H))."""
    params = {"rnn": []}
    bound = 1.0 / jnp.sqrt(jnp.float32(n_hidden))
    for layer in range(n_layer):
        d_in = input_size if layer == 0 else n_hidden
        key, k1, k2, k3, k4 = jax.random.split(key, 5)
        w_ih = jax.random.uniform(k1, (n_hidden, d_in), jnp.float32, -bound, bound)
        w_hh = jax.random.uniform(k2, (n_hidden, n_hidden), jnp.float32, -bound, bound)
        b_ih = jax.random.uniform(k3, (n_hidden,), jnp.float32, -bound, bound)
        b_hh = jax.random.uniform(k4, (n_hidden,), jnp.float32, -bound, bound)
        params["rnn"].append((w_ih, w_hh, b_ih, b_hh))
    key, k5, k6 = jax.random.split(key, 3)
    fc_bound = 1.0 / jnp.sqrt(jnp.float32(n_hidden))
    params["fc_w"] = jax.random.uniform(
        k5, (output_size, n_hidden), jnp.float32, -fc_bound, fc_bound
    )
    params["fc_b"] = jax.random.uniform(
        k6, (output_size,), jnp.float32, -fc_bound, fc_bound
    )
    return params


if __name__ == "__main__":
    # Small config consistent with the module's forward:
    batch, seq = 2, 8
    input_size, n_hidden, n_layer, output_size = 16, 32, 2, 10

    key = jax.random.PRNGKey(0)
    key, kx, kp = jax.random.split(key, 3)
    x = jax.random.normal(kx, (batch, seq, input_size), jnp.float32)
    params = init_params(kp, input_size, n_hidden, n_layer, output_size)

    # One-time weight layout prep (transpose / pad) outside the forward path.
    prepped = prepare_params(params, input_size, n_hidden, n_layer, output_size)

    out = rnn_model_forward(x, prepped, output_size)
    out = jax.block_until_ready(out)

    ref = rnn_model_reference(x, params, n_layer)
    assert out.shape == (batch, seq, output_size), out.shape
    assert jnp.allclose(out, ref, atol=1e-4, rtol=1e-4), (
        float(jnp.max(jnp.abs(out - ref)))
    )

    print("KERNEL_OK")
</pallas_src>

<mosaic_0001>
module attributes {stable_mosaic.version = 11 : i64} {
  func.func @kernel(%arg0: memref<64x128xf32, #tpu.memory_space<vmem>>, %arg1: memref<128x128xf32, #tpu.memory_space<vmem>>, %arg2: memref<128x128xf32, #tpu.memory_space<vmem>>, %arg3: memref<1x128xf32, #tpu.memory_space<vmem>>, %arg4: memref<128x128xf32, #tpu.memory_space<vmem>>, %arg5: memref<128x128xf32, #tpu.memory_space<vmem>>, %arg6: memref<1x128xf32, #tpu.memory_space<vmem>>, %arg7: memref<128x128xf32, #tpu.memory_space<vmem>>, %arg8: memref<1x128xf32, #tpu.memory_space<vmem>>, %arg9: memref<64x128xf32, #tpu.memory_space<vmem>>, %arg10: memref<64x128xf32, #tpu.memory_space<vmem>>) attributes {dimension_semantics = [], scalar_prefetch = 0 : i64, scratch_operands = 1 : i64, tpu.core_type = #tpu.core_type<tc>} {
    %c0 = arith.constant 0 : index
    %c0_0 = arith.constant 0 : index
    %0 = vector.load %arg0[%c0, %c0_0] : memref<64x128xf32, #tpu.memory_space<vmem>>, vector<64x128xf32>
    %c0_1 = arith.constant 0 : index
    %c0_2 = arith.constant 0 : index
    %1 = vector.load %arg1[%c0_1, %c0_2] : memref<128x128xf32, #tpu.memory_space<vmem>>, vector<128x128xf32>
    %cst = arith.constant dense<0.000000e+00> : vector<64x128xf32>
    %2 = tpu.matmul %0, %1, %cst {dimension_numbers = #tpu.dot_dimension_numbers<[1], [0], [0], [1], [0, 0, 1, 1], [], []>} : vector<64x128xf32>, vector<128x128xf32>, vector<64x128xf32> -> vector<64x128xf32>
    %c0_3 = arith.constant 0 : index
    %c0_4 = arith.constant 0 : index
    %3 = vector.load %arg3[%c0_3, %c0_4] : memref<1x128xf32, #tpu.memory_space<vmem>>, vector<1x128xf32>
    %4 = vector.broadcast %3 : vector<1x128xf32> to vector<64x128xf32>
    %5 = arith.addf %2, %4 : vector<64x128xf32>
    %c0_5 = arith.constant 0 : index
    %c0_6 = arith.constant 0 : index
    %6 = vector.load %arg10[%c0_5, %c0_6] : memref<64x128xf32, #tpu.memory_space<vmem>>, vector<64x128xf32>
    tpu.vector_store %arg10[%c0_5, %c0_6], %5 {strides = array<i32>} : memref<64x128xf32, #tpu.memory_space<vmem>>, vector<64x128xf32>,
    %c0_7 = arith.constant 0 : index
    %c0_8 = arith.constant 0 : index
    %7 = vector.load %arg2[%c0_7, %c0_8] : memref<128x128xf32, #tpu.memory_space<vmem>>, vector<128x128xf32>
    %cst_9 = arith.constant 0.000000e+00 : f32
    %8 = vector.broadcast %cst_9 : f32 to vector<8x128xf32>
    %c0_i32 = arith.constant 0 : i32
    %c8_i32 = arith.constant 8 : i32
    %9 = arith.muli %c0_i32, %c8_i32 : i32
    %10 = tpu.assume_multiple %9, 8 : i32
    %11 = arith.index_cast %10 : i32 to index
    %c0_10 = arith.constant 0 : index
    %12 = vector.load %arg10[%11, %c0_10] : memref<64x128xf32, #tpu.memory_space<vmem>>, vector<8x128xf32>
    %cst_11 = arith.constant dense<0.000000e+00> : vector<8x128xf32>
    %13 = tpu.matmul %8, %7, %cst_11 {dimension_numbers = #tpu.dot_dimension_numbers<[1], [0], [0], [1], [0, 0, 1, 1], [], []>} : vector<8x128xf32>, vector<128x128xf32>, vector<8x128xf32> -> vector<8x128xf32>
    %14 = arith.addf %12, %13 : vector<8x128xf32>
    %15 = math.tanh %14 : vector<8x128xf32>
    %16 = arith.index_cast %10 : i32 to index
    %c0_12 = arith.constant 0 : index
    %17 = vector.load %arg10[%16, %c0_12] : memref<64x128xf32, #tpu.memory_space<vmem>>, vector<8x128xf32>
    tpu.vector_store %arg10[%16, %c0_12], %15 {strides = array<i32>} : memref<64x128xf32, #tpu.memory_space<vmem>>, vector<8x128xf32>,
    %c1_i32 = arith.constant 1 : i32
    %c8_i32_13 = arith.constant 8 : i32
    %18 = arith.muli %c1_i32, %c8_i32_13 : i32
    %19 = tpu.assume_multiple %18, 8 : i32
    %20 = arith.index_cast %19 : i32 to index
    %c0_14 = arith.constant 0 : index
    %21 = vector.load %arg10[%20, %c0_14] : memref<64x128xf32, #tpu.memory_space<vmem>>, vector<8x128xf32>
    %cst_15 = arith.constant dense<0.000000e+00> : vector<8x128xf32>
    %22 = tpu.matmul %15, %7, %cst_15 {dimension_numbers = #tpu.dot_dimension_numbers<[1], [0], [0], [1], [0, 0, 1, 1], [], []>} : vector<8x128xf32>, vector<128x128xf32>, vector<8x128xf32> -> vector<8x128xf32>
    %23 = arith.addf %21, %22 : vector<8x128xf32>
    %24 = math.tanh %23 : vector<8x128xf32>
    %25 = arith.index_cast %19 : i32 to index
    %c0_16 = arith.constant 0 : index
    %26 = vector.load %arg10[%25, %c0_16] : memref<64x128xf32, #tpu.memory_space<vmem>>, vector<8x128xf32>
    tpu.vector_store %arg10[%25, %c0_16], %24 {strides = array<i32>} : memref<64x128xf32, #tpu.memory_space<vmem>>, vector<8x128xf32>,
    %c2_i32 = arith.constant 2 : i32
    %c8_i32_17 = arith.constant 8 : i32
    %27 = arith.muli %c2_i32, %c8_i32_17 : i32
    %28 = tpu.assume_multiple %27, 8 : i32
    %29 = arith.index_cast %28 : i32 to index
    %c0_18 = arith.constant 0 : index
    %30 = vector.load %arg10[%29, %c0_18] : memref<64x128xf32, #tpu.memory_space<vmem>>, vector<8x128xf32>
    %cst_19 = arith.constant dense<0.000000e+00> : vector<8x128xf32>
    %31 = tpu.matmul %24, %7, %cst_19 {dimension_numbers = #tpu.dot_dimension_numbers<[1], [0], [0], [1], [0, 0, 1, 1], [], []>} : vector<8x128xf32>, vector<128x128xf32>, vector<8x128xf32> -> vector<8x128xf32>
    %32 = arith.addf %30, %31 : vector<8x128xf32>
    %33 = math.tanh %32 : vector<8x128xf32>
    %34 = arith.index_cast %28 : i32 to index
    %c0_20 = arith.constant 0 : index
    %35 = vector.load %arg10[%34, %c0_20] : memref<64x128xf32, #tpu.memory_space<vmem>>, vector<8x128xf32>
    tpu.vector_store %arg10[%34, %c0_20], %33 {strides = array<i32>} : memref<64x128xf32, #tpu.memory_space<vmem>>, vector<8x128xf32>,
    %c3_i32 = arith.constant 3 : i32
    %c8_i32_21 = arith.constant 8 : i32
    %36 = arith.muli %c3_i32, %c8_i32_21 : i32
    %37 = tpu.assume_multiple %36, 8 : i32
    %38 = arith.index_cast %37 : i32 to index
    %c0_22 = arith.constant 0 : index
    %39 = vector.load %arg10[%38, %c0_22] : memref<64x128xf32, #tpu.memory_space<vmem>>, vector<8x128xf32>
    %cst_23 = arith.constant dense<0.000000e+00> : vector<8x128xf32>
    %40 = tpu.matmul %33, %7, %cst_23 {dimension_numbers = #tpu.dot_dimension_numbers<[1], [0], [0], [1], [0, 0, 1, 1], [], []>} : vector<8x128xf32>, vector<128x128xf32>, vector<8x128xf32> -> vector<8x128xf32>
    %41 = arith.addf %39, %40 : vector<8x128xf32>
    %42 = math.tanh %41 : vector<8x128xf32>
    %43 = arith.index_cast %37 : i32 to index
    %c0_24 = arith.constant 0 : index
    %44 = vector.load %arg10[%43, %c0_24] : memref<64x128xf32, #tpu.memory_space<vmem>>, vector<8x128xf32>
    tpu.vector_store %arg10[%43, %c0_24], %42 {strides = array<i32>} : memref<64x128xf32, #tpu.memory_space<vmem>>, vector<8x128xf32>,
    %c4_i32 = arith.constant 4 : i32
    %c8_i32_25 = arith.constant 8 : i32
    %45 = arith.muli %c4_i32, %c8_i32_25 : i32
    %46 = tpu.assume_multiple %45, 8 : i32
    %47 = arith.index_cast %46 : i32 to index
    %c0_26 = arith.constant 0 : index
    %48 = vector.load %arg10[%47, %c0_26] : memref<64x128xf32, #tpu.memory_space<vmem>>, vector<8x128xf32>
    %cst_27 = arith.constant dense<0.000000e+00> : vector<8x128xf32>
    %49 = tpu.matmul %42, %7, %cst_27 {dimension_numbers = #tpu.dot_dimension_numbers<[1], [0], [0], [1], [0, 0, 1, 1], [], []>} : vector<8x128xf32>, vector<128x128xf32>, vector<8x128xf32> -> vector<8x128xf32>
    %50 = arith.addf %48, %49 : vector<8x128xf32>
    %51 = math.tanh %50 : vector<8x128xf32>
    %52 = arith.index_cast %46 : i32 to index
    %c0_28 = arith.constant 0 : index
    %53 = vector.load %arg10[%52, %c0_28] : memref<64x128xf32, #tpu.memory_space<vmem>>, vector<8x128xf32>
    tpu.vector_store %arg10[%52, %c0_28], %51 {strides = array<i32>} : memref<64x128xf32, #tpu.memory_space<vmem>>, vector<8x128xf32>,
    %c5_i32 = arith.constant 5 : i32
    %c8_i32_29 = arith.constant 8 : i32
    %54 = arith.muli %c5_i32, %c8_i32_29 : i32
    %55 = tpu.assume_multiple %54, 8 : i32
    %56 = arith.index_cast %55 : i32 to index
    %c0_30 = arith.constant 0 : index
    %57 = vector.load %arg10[%56, %c0_30] : memref<64x128xf32, #tpu.memory_space<vmem>>, vector<8x128xf32>
    %cst_31 = arith.constant dense<0.000000e+00> : vector<8x128xf32>
    %58 = tpu.matmul %51, %7, %cst_31 {dimension_numbers = #tpu.dot_dimension_numbers<[1], [0], [0], [1], [0, 0, 1, 1], [], []>} : vector<8x128xf32>, vector<128x128xf32>, vector<8x128xf32> -> vector<8x128xf32>
    %59 = arith.addf %57, %58 : vector<8x128xf32>
    %60 = math.tanh %59 : vector<8x128xf32>
    %61 = arith.index_cast %55 : i32 to index
    %c0_32 = arith.constant 0 : index
    %62 = vector.load %arg10[%61, %c0_32] : memref<64x128xf32, #tpu.memory_space<vmem>>, vector<8x128xf32>
    tpu.vector_store %arg10[%61, %c0_32], %60 {strides = array<i32>} : memref<64x128xf32, #tpu.memory_space<vmem>>, vector<8x128xf32>,
    %c6_i32 = arith.constant 6 : i32
    %c8_i32_33 = arith.constant 8 : i32
    %63 = arith.muli %c6_i32, %c8_i32_33 : i32
    %64 = tpu.assume_multiple %63, 8 : i32
    %65 = arith.index_cast %64 : i32 to index
    %c0_34 = arith.constant 0 : index
    %66 = vector.load %arg10[%65, %c0_34] : memref<64x128xf32, #tpu.memory_space<vmem>>, vector<8x128xf32>
    %cst_35 = arith.constant dense<0.000000e+00> : vector<8x128xf32>
    %67 = tpu.matmul %60, %7, %cst_35 {dimension_numbers = #tpu.dot_dimension_numbers<[1], [0], [0], [1], [0, 0, 1, 1], [], []>} : vector<8x128xf32>, vector<128x128xf32>, vector<8x128xf32> -> vector<8x128xf32>
    %68 = arith.addf %66, %67 : vector<8x128xf32>
    %69 = math.tanh %68 : vector<8x128xf32>
    %70 = arith.index_cast %64 : i32 to index
    %c0_36 = arith.constant 0 : index
    %71 = vector.load %arg10[%70, %c0_36] : memref<64x128xf32, #tpu.memory_space<vmem>>, vector<8x128xf32>
    tpu.vector_store %arg10[%70, %c0_36], %69 {strides = array<i32>} : memref<64x128xf32, #tpu.memory_space<vmem>>, vector<8x128xf32>,
    %c7_i32 = arith.constant 7 : i32
    %c8_i32_37 = arith.constant 8 : i32
    %72 = arith.muli %c7_i32, %c8_i32_37 : i32
    %73 = tpu.assume_multiple %72, 8 : i32
    %74 = arith.index_cast %73 : i32 to index
    %c0_38 = arith.constant 0 : index
    %75 = vector.load %arg10[%74, %c0_38] : memref<64x128xf32, #tpu.memory_space<vmem>>, vector<8x128xf32>
    %cst_39 = arith.constant dense<0.000000e+00> : vector<8x128xf32>
    %76 = tpu.matmul %69, %7, %cst_39 {dimension_numbers = #tpu.dot_dimension_numbers<[1], [0], [0], [1], [0, 0, 1, 1], [], []>} : vector<8x128xf32>, vector<128x128xf32>, vector<8x128xf32> -> vector<8x128xf32>
    %77 = arith.addf %75, %76 : vector<8x128xf32>
    %78 = math.tanh %77 : vector<8x128xf32>
    %79 = arith.index_cast %73 : i32 to index
    %c0_40 = arith.constant 0 : index
    %80 = vector.load %arg10[%79, %c0_40] : memref<64x128xf32, #tpu.memory_space<vmem>>, vector<8x128xf32>
    tpu.vector_store %arg10[%79, %c0_40], %78 {strides = array<i32>} : memref<64x128xf32, #tpu.memory_space<vmem>>, vector<8x128xf32>,
    %c8_i32_41 = arith.constant 8 : i32
    %c0_42 = arith.constant 0 : index
    %c0_43 = arith.constant 0 : index
    %81 = vector.load %arg10[%c0_42, %c0_43] : memref<64x128xf32, #tpu.memory_space<vmem>>, vector<64x128xf32>
    %c0_44 = arith.constant 0 : index
    %c0_45 = arith.constant 0 : index
    %82 = vector.load %arg4[%c0_44, %c0_45] : memref<128x128xf32, #tpu.memory_space<vmem>>, vector<128x128xf32>
    %cst_46 = arith.constant dense<0.000000e+00> : vector<64x128xf32>
    %83 = tpu.matmul %81, %82, %cst_46 {dimension_numbers = #tpu.dot_dimension_numbers<[1], [0], [0], [1], [0, 0, 1, 1], [], []>} : vector<64x128xf32>, vector<128x128xf32>, vector<64x128xf32> -> vector<64x128xf32>
    %c0_47 = arith.constant 0 : index
    %c0_48 = arith.constant 0 : index
    %84 = vector.load %arg6[%c0_47, %c0_48] : memref<1x128xf32, #tpu.memory_space<vmem>>, vector<1x128xf32>
    %85 = vector.broadcast %84 : vector<1x128xf32> to vector<64x128xf32>
    %86 = arith.addf %83, %85 : vector<64x128xf32>
    %c0_49 = arith.constant 0 : index
    %c0_50 = arith.constant 0 : index
    %87 = vector.load %arg10[%c0_49, %c0_50] : memref<64x128xf32, #tpu.memory_space<vmem>>, vector<64x128xf32>
    tpu.vector_store %arg10[%c0_49, %c0_50], %86 {strides = array<i32>} : memref<64x128xf32, #tpu.memory_space<vmem>>, vector<64x128xf32>,
    %c0_51 = arith.constant 0 : index
    %c0_52 = arith.constant 0 : index
    %88 = vector.load %arg5[%c0_51, %c0_52] : memref<128x128xf32, #tpu.memory_space<vmem>>, vector<128x128xf32>
    %cst_53 = arith.constant 0.000000e+00 : f32
    %89 = vector.broadcast %cst_53 : f32 to vector<8x128xf32>
    %c0_i32_54 = arith.constant 0 : i32
    %c8_i32_55 = arith.constant 8 : i32
    %90 = arith.muli %c0_i32_54, %c8_i32_55 : i32
    %91 = tpu.assume_multiple %90, 8 : i32
    %92 = arith.index_cast %91 : i32 to index
    %c0_56 = arith.constant 0 : index
    %93 = vector.load %arg10[%92, %c0_56] : memref<64x128xf32, #tpu.memory_space<vmem>>, vector<8x128xf32>
    %cst_57 = arith.constant dense<0.000000e+00> : vector<8x128xf32>
    %94 = tpu.matmul %89, %88, %cst_57 {dimension_numbers = #tpu.dot_dimension_numbers<[1], [0], [0], [1], [0, 0, 1, 1], [], []>} : vector<8x128xf32>, vector<128x128xf32>, vector<8x128xf32> -> vector<8x128xf32>
    %95 = arith.addf %93, %94 : vector<8x128xf32>
    %96 = math.tanh %95 : vector<8x128xf32>
    %97 = arith.index_cast %91 : i32 to index
    %c0_58 = arith.constant 0 : index
    %98 = vector.load %arg10[%97, %c0_58] : memref<64x128xf32, #tpu.memory_space<vmem>>, vector<8x128xf32>
    tpu.vector_store %arg10[%97, %c0_58], %96 {strides = array<i32>} : memref<64x128xf32, #tpu.memory_space<vmem>>, vector<8x128xf32>,
    %c1_i32_59 = arith.constant 1 : i32
    %c8_i32_60 = arith.constant 8 : i32
    %99 = arith.muli %c1_i32_59, %c8_i32_60 : i32
    %100 = tpu.assume_multiple %99, 8 : i32
    %101 = arith.index_cast %100 : i32 to index
    %c0_61 = arith.constant 0 : index
    %102 = vector.load %arg10[%101, %c0_61] : memref<64x128xf32, #tpu.memory_space<vmem>>, vector<8x128xf32>
    %cst_62 = arith.constant dense<0.000000e+00> : vector<8x128xf32>
    %103 = tpu.matmul %96, %88, %cst_62 {dimension_numbers = #tpu.dot_dimension_numbers<[1], [0], [0], [1], [0, 0, 1, 1], [], []>} : vector<8x128xf32>, vector<128x128xf32>, vector<8x128xf32> -> vector<8x128xf32>
    %104 = arith.addf %102, %103 : vector<8x128xf32>
    %105 = math.tanh %104 : vector<8x128xf32>
    %106 = arith.index_cast %100 : i32 to index
    %c0_63 = arith.constant 0 : index
    %107 = vector.load %arg10[%106, %c0_63] : memref<64x128xf32, #tpu.memory_space<vmem>>, vector<8x128xf32>
    tpu.vector_store %arg10[%106, %c0_63], %105 {strides = array<i32>} : memref<64x128xf32, #tpu.memory_space<vmem>>, vector<8x128xf32>,
    %c2_i32_64 = arith.constant 2 : i32
    %c8_i32_65 = arith.constant 8 : i32
    %108 = arith.muli %c2_i32_64, %c8_i32_65 : i32
    %109 = tpu.assume_multiple %108, 8 : i32
    %110 = arith.index_cast %109 : i32 to index
    %c0_66 = arith.constant 0 : index
    %111 = vector.load %arg10[%110, %c0_66] : memref<64x128xf32, #tpu.memory_space<vmem>>, vector<8x128xf32>
    %cst_67 = arith.constant dense<0.000000e+00> : vector<8x128xf32>
    %112 = tpu.matmul %105, %88, %cst_67 {dimension_numbers = #tpu.dot_dimension_numbers<[1], [0], [0], [1], [0, 0, 1, 1], [], []>} : vector<8x128xf32>, vector<128x128xf32>, vector<8x128xf32> -> vector<8x128xf32>
    %113 = arith.addf %111, %112 : vector<8x128xf32>
    %114 = math.tanh %113 : vector<8x128xf32>
    %115 = arith.index_cast %109 : i32 to index
    %c0_68 = arith.constant 0 : index
    %116 = vector.load %arg10[%115, %c0_68] : memref<64x128xf32, #tpu.memory_space<vmem>>, vector<8x128xf32>
    tpu.vector_store %arg10[%115, %c0_68], %114 {strides = array<i32>} : memref<64x128xf32, #tpu.memory_space<vmem>>, vector<8x128xf32>,
    %c3_i32_69 = arith.constant 3 : i32
    %c8_i32_70 = arith.constant 8 : i32
    %117 = arith.muli %c3_i32_69, %c8_i32_70 : i32
    %118 = tpu.assume_multiple %117, 8 : i32
    %119 = arith.index_cast %118 : i32 to index
    %c0_71 = arith.constant 0 : index
    %120 = vector.load %arg10[%119, %c0_71] : memref<64x128xf32, #tpu.memory_space<vmem>>, vector<8x128xf32>
    %cst_72 = arith.constant dense<0.000000e+00> : vector<8x128xf32>
    %121 = tpu.matmul %114, %88, %cst_72 {dimension_numbers = #tpu.dot_dimension_numbers<[1], [0], [0], [1], [0, 0, 1, 1], [], []>} : vector<8x128xf32>, vector<128x128xf32>, vector<8x128xf32> -> vector<8x128xf32>
    %122 = arith.addf %120, %121 : vector<8x128xf32>
    %123 = math.tanh %122 : vector<8x128xf32>
    %124 = arith.index_cast %118 : i32 to index
    %c0_73 = arith.constant 0 : index
    %125 = vector.load %arg10[%124, %c0_73] : memref<64x128xf32, #tpu.memory_space<vmem>>, vector<8x128xf32>
    tpu.vector_store %arg10[%124, %c0_73], %123 {strides = array<i32>} : memref<64x128xf32, #tpu.memory_space<vmem>>, vector<8x128xf32>,
    %c4_i32_74 = arith.constant 4 : i32
    %c8_i32_75 = arith.constant 8 : i32
    %126 = arith.muli %c4_i32_74, %c8_i32_75 : i32
    %127 = tpu.assume_multiple %126, 8 : i32
    %128 = arith.index_cast %127 : i32 to index
    %c0_76 = arith.constant 0 : index
    %129 = vector.load %arg10[%128, %c0_76] : memref<64x128xf32, #tpu.memory_space<vmem>>, vector<8x128xf32>
    %cst_77 = arith.constant dense<0.000000e+00> : vector<8x128xf32>
    %130 = tpu.matmul %123, %88, %cst_77 {dimension_numbers = #tpu.dot_dimension_numbers<[1], [0], [0], [1], [0, 0, 1, 1], [], []>} : vector<8x128xf32>, vector<128x128xf32>, vector<8x128xf32> -> vector<8x128xf32>
    %131 = arith.addf %129, %130 : vector<8x128xf32>
    %132 = math.tanh %131 : vector<8x128xf32>
    %133 = arith.index_cast %127 : i32 to index
    %c0_78 = arith.constant 0 : index
    %134 = vector.load %arg10[%133, %c0_78] : memref<64x128xf32, #tpu.memory_space<vmem>>, vector<8x128xf32>
    tpu.vector_store %arg10[%133, %c0_78], %132 {strides = array<i32>} : memref<64x128xf32, #tpu.memory_space<vmem>>, vector<8x128xf32>,
    %c5_i32_79 = arith.constant 5 : i32
    %c8_i32_80 = arith.constant 8 : i32
    %135 = arith.muli %c5_i32_79, %c8_i32_80 : i32
    %136 = tpu.assume_multiple %135, 8 : i32
    %137 = arith.index_cast %136 : i32 to index
    %c0_81 = arith.constant 0 : index
    %138 = vector.load %arg10[%137, %c0_81] : memref<64x128xf32, #tpu.memory_space<vmem>>, vector<8x128xf32>
    %cst_82 = arith.constant dense<0.000000e+00> : vector<8x128xf32>
    %139 = tpu.matmul %132, %88, %cst_82 {dimension_numbers = #tpu.dot_dimension_numbers<[1], [0], [0], [1], [0, 0, 1, 1], [], []>} : vector<8x128xf32>, vector<128x128xf32>, vector<8x128xf32> -> vector<8x128xf32>
    %140 = arith.addf %138, %139 : vector<8x128xf32>
    %141 = math.tanh %140 : vector<8x128xf32>
    %142 = arith.index_cast %136 : i32 to index
    %c0_83 = arith.constant 0 : index
    %143 = vector.load %arg10[%142, %c0_83] : memref<64x128xf32, #tpu.memory_space<vmem>>, vector<8x128xf32>
    tpu.vector_store %arg10[%142, %c0_83], %141 {strides = array<i32>} : memref<64x128xf32, #tpu.memory_space<vmem>>, vector<8x128xf32>,
    %c6_i32_84 = arith.constant 6 : i32
    %c8_i32_85 = arith.constant 8 : i32
    %144 = arith.muli %c6_i32_84, %c8_i32_85 : i32
    %145 = tpu.assume_multiple %144, 8 : i32
    %146 = arith.index_cast %145 : i32 to index
    %c0_86 = arith.constant 0 : index
    %147 = vector.load %arg10[%146, %c0_86] : memref<64x128xf32, #tpu.memory_space<vmem>>, vector<8x128xf32>
    %cst_87 = arith.constant dense<0.000000e+00> : vector<8x128xf32>
    %148 = tpu.matmul %141, %88, %cst_87 {dimension_numbers = #tpu.dot_dimension_numbers<[1], [0], [0], [1], [0, 0, 1, 1], [], []>} : vector<8x128xf32>, vector<128x128xf32>, vector<8x128xf32> -> vector<8x128xf32>
    %149 = arith.addf %147, %148 : vector<8x128xf32>
    %150 = math.tanh %149 : vector<8x128xf32>
    %151 = arith.index_cast %145 : i32 to index
    %c0_88 = arith.constant 0 : index
    %152 = vector.load %arg10[%151, %c0_88] : memref<64x128xf32, #tpu.memory_space<vmem>>, vector<8x128xf32>
    tpu.vector_store %arg10[%151, %c0_88], %150 {strides = array<i32>} : memref<64x128xf32, #tpu.memory_space<vmem>>, vector<8x128xf32>,
    %c7_i32_89 = arith.constant 7 : i32
    %c8_i32_90 = arith.constant 8 : i32
    %153 = arith.muli %c7_i32_89, %c8_i32_90 : i32
    %154 = tpu.assume_multiple %153, 8 : i32
    %155 = arith.index_cast %154 : i32 to index
    %c0_91 = arith.constant 0 : index
    %156 = vector.load %arg10[%155, %c0_91] : memref<64x128xf32, #tpu.memory_space<vmem>>, vector<8x128xf32>
    %cst_92 = arith.constant dense<0.000000e+00> : vector<8x128xf32>
    %157 = tpu.matmul %150, %88, %cst_92 {dimension_numbers = #tpu.dot_dimension_numbers<[1], [0], [0], [1], [0, 0, 1, 1], [], []>} : vector<8x128xf32>, vector<128x128xf32>, vector<8x128xf32> -> vector<8x128xf32>
    %158 = arith.addf %156, %157 : vector<8x128xf32>
    %159 = math.tanh %158 : vector<8x128xf32>
    %160 = arith.index_cast %154 : i32 to index
    %c0_93 = arith.constant 0 : index
    %161 = vector.load %arg10[%160, %c0_93] : memref<64x128xf32, #tpu.memory_space<vmem>>, vector<8x128xf32>
    tpu.vector_store %arg10[%160, %c0_93], %159 {strides = array<i32>} : memref<64x128xf32, #tpu.memory_space<vmem>>, vector<8x128xf32>,
    %c8_i32_94 = arith.constant 8 : i32
    %c0_95 = arith.constant 0 : index
    %c0_96 = arith.constant 0 : index
    %162 = vector.load %arg10[%c0_95, %c0_96] : memref<64x128xf32, #tpu.memory_space<vmem>>, vector<64x128xf32>
    %c0_97 = arith.constant 0 : index
    %c0_98 = arith.constant 0 : index
    %163 = vector.load %arg7[%c0_97, %c0_98] : memref<128x128xf32, #tpu.memory_space<vmem>>, vector<128x128xf32>
    %cst_99 = arith.constant dense<0.000000e+00> : vector<64x128xf32>
    %164 = tpu.matmul %162, %163, %cst_99 {dimension_numbers = #tpu.dot_dimension_numbers<[1], [0], [0], [1], [0, 0, 1, 1], [], []>} : vector<64x128xf32>, vector<128x128xf32>, vector<64x128xf32> -> vector<64x128xf32>
    %c0_100 = arith.constant 0 : index
    %c0_101 = arith.constant 0 : index
    %165 = vector.load %arg8[%c0_100, %c0_101] : memref<1x128xf32, #tpu.memory_space<vmem>>, vector<1x128xf32>
    %166 = vector.broadcast %165 : vector<1x128xf32> to vector<64x128xf32>
    %167 = arith.addf %164, %166 : vector<64x128xf32>
    %c0_102 = arith.constant 0 : index
    %c0_103 = arith.constant 0 : index
    %168 = vector.load %arg9[%c0_102, %c0_103] : memref<64x128xf32, #tpu.memory_space<vmem>>, vector<64x128xf32>
    tpu.vector_store %arg9[%c0_102, %c0_103], %167 {strides = array<i32>} : memref<64x128xf32, #tpu.memory_space<vmem>>, vector<64x128xf32>,
    return
  }
}

</mosaic_0001>

<bundles_post_ra>
// kernel: rnn_model_forward.1
= control target key start
LH: loop header
LB: loop body
LE: loop exit
PB: predicated region body
PF: predicated region fallthrough
CT: control target
= control target key end

     0   :  { %14 = vsyncpa [#allocation4], 0  ;;  %s1456_s0 = inlined_call_operand.vmem [shape: f32[64,128], index: 0, kind: input, shape index: {}]   ;;  %s1457_s1 = inlined_call_operand.hbm [shape: f32[128,128], index: 1, kind: input, shape index: {}]   ;;  %s1458_s2 = inlined_call_operand.hbm [shape: f32[128,128], index: 2, kind: input, shape index: {}]   ;;  %s1459_s3 = inlined_call_operand.vmem [shape: f32[1,128], index: 3, kind: input, shape index: {}]   ;;  %s1460_s4 = inlined_call_operand.hbm [shape: f32[128,128], index: 4, kind: input, shape index: {}]   ;;  %s1461_s5 = inlined_call_operand.hbm [shape: f32[128,128], index: 5, kind: input, shape index: {}]   ;;  %s1462_s6 = inlined_call_operand.vmem [shape: f32[1,128], index: 6, kind: input, shape index: {}]   ;;  %s1463_s7 = inlined_call_operand.hbm [shape: f32[128,128], index: 7, kind: input, shape index: {}]   ;;  %s1464_s8 = inlined_call_operand.vmem [shape: f32[1,128], index: 8, kind: input, shape index: {}]   ;;  %s1465_s9 = inlined_call_operand.vmem [shape: f32[64,128], index: 9, kind: output, shape index: {}]  }
   0x1   :  { %15 = vsyncpa [#allocation6], 0 }
   0x2   :  { %16 = vsyncpa [#allocation9], 0  ;;  %s36_s11 = sshll.u32 %s1458_s2, 4  ;;  %s956_s12 = smov [#allocation5]   ;;  %s37_s11 = int_to_ptr.hbm [resolvable:$true] %s36_s11 }
   0x3   :  { %s38_s13 = sshll.u32 %s956_s12, 4  ;;  %s64_s16 = sshll.u32 %s1461_s5, 4  ;;  %s39_s13 = int_to_ptr.vmem [resolvable:$true] %s38_s13  ;;  %s65_s16 = int_to_ptr.hbm [resolvable:$true] %s64_s16 }
   0x4   :  { %s957_s17 = smov 128   ;;  %s958_s18 = smov 8  }
   0x5   :  { %44 = dma.hbm_to_vmem [thread:$0]  %s37_s11, 2048, %s39_s13, [#allocation6], %s957_s17, %s957_s17, %s958_s18  }
   0x6   :  { %s959_s19 = smov [#allocation8]   ;;  %s23_s23 = sshll.u32 %s1457_s1, 4  ;;  %s24_s23 = int_to_ptr.hbm [resolvable:$true] %s23_s23 }
   0x7   :  { %s66_s20 = sshll.u32 %s959_s19, 4  ;;  %s51_s25 = sshll.u32 %s1460_s4, 4  ;;  %s67_s20 = int_to_ptr.vmem [resolvable:$true] %s66_s20  ;;  %s52_s25 = int_to_ptr.hbm [resolvable:$true] %s51_s25 }
   0x8   :  { %72 = dma.hbm_to_vmem [thread:$0]  %s65_s16, 2048, %s67_s20, [#allocation9], %s957_s17, %s957_s17, %s958_s18  }
   0x9   :  { %s960_s26 = smov [#allocation3]   ;;  %s961_s5 = smov [#allocation7]  }
   0xa   :  { %s25_s27 = sshll.u32 %s960_s26, 4  ;;  %s53_s28 = sshll.u32 %s961_s5, 4  ;;  %s26_s27 = int_to_ptr.vmem [resolvable:$true] %s25_s27  ;;  %s54_s28 = int_to_ptr.vmem [resolvable:$true] %s53_s28 }
   0xb   :  { %31 = dma.hbm_to_vmem [thread:$0]  %s24_s23, 2048, %s26_s27, [#allocation4], %s957_s17, %s957_s17, %s958_s18  }
   0xc   :  { %s79_s10 = sshll.u32 %s1463_s7, 4  ;;  %s962_s1 = smov [#allocation10]   ;;  %s80_s10 = int_to_ptr.hbm [resolvable:$true] %s79_s10 }
   0xd   :  { %59 = dma.hbm_to_vmem [thread:$0]  %s52_s25, 2048, %s54_s28, [#allocation6], %s957_s17, %s957_s17, %s958_s18  }
   0xe   :  { %s81_s11 = sshll.u32 %s962_s1, 4  ;;  %s82_s11 = int_to_ptr.vmem [resolvable:$true] %s81_s11 }
   0xf   :  { %87 = dma.hbm_to_vmem [thread:$0]  %s80_s10, 2048, %s82_s11, [#allocation9], %s957_s17, %s957_s17, %s958_s18  }
  0x10   :  { %950 = dma.done.wait [#allocation4], 2048  }
  0x11   :  { %951 = vsyncadd [#allocation4], 4294965248 }
  0x12   :  { %952 = dma.done.wait [#allocation6], 4096  }
  0x13   :  { %953 = vsyncadd [#allocation6], 4294963200 }
  0x14   :  { %954 = dma.done.wait [#allocation9], 4096  }
  0x15   :  { %955 = vsyncadd [#allocation9], 4294963200  ;;  %v133_v0 = vld [vmem:[#allocation3 + $0x78] sm:$0xff]  ;;  %v132_v1 = vld [vmem:[#allocation3 + $0x70] sm:$0xff]  ;;  %v963_v36 = vmov 0.0  }
  0x16   :  { %138 = vmatpush.msra.mxu1 %v133_v0  ;;  %771 = vmatpush.msra.mxu2 %v133_v0  ;;  %v131_v2 = vld [vmem:[#allocation3 + $0x68] sm:$0xff]  ;;  %v130_v3 = vld [vmem:[#allocation3 + $0x60] sm:$0xff]  ;;  %v1029_v4 = vld [vmem:[#allocation5 + $0x78] sm:$0xff] }
  0x17   :  { %v129_v5 = vld [vmem:[#allocation3 + $0x58] sm:$0xff]  ;;  %254 = vmatpush.msra.mxu3 %v1029_v4  ;;  %354 = vmatpush.msra.mxu0 %v1029_v4  ;;  %v1033_v6 = vld [vmem:[#allocation5 + $0x70] sm:$0xff]  ;;  %v1037_v8 = vld [vmem:[#allocation5 + $0x68] sm:$0xff] }
  0x18   :  { %139 = vmatpush.msra.mxu1 %v132_v1  ;;  %772 = vmatpush.msra.mxu2 %v132_v1  ;;  %v128_v7 = vld [vmem:[#allocation3 + $0x50] sm:$0xff]  ;;  %v127_v9 = vld [vmem:[#allocation3 + $0x48] sm:$0xff]  ;;  %v1041_v10 = vld [vmem:[#allocation5 + $0x60] sm:$0xff] }
  0x19   :  { %255 = vmatpush.msra.mxu3 %v1033_v6  ;;  %355 = vmatpush.msra.mxu0 %v1033_v6  ;;  %v126_v11 = vld [vmem:[#allocation3 + $0x40] sm:$0xff]  ;;  %v1045_v12 = vld [vmem:[#allocation5 + $0x58] sm:$0xff]  ;;  %v1049_v14 = vld [vmem:[#allocation5 + $0x50] sm:$0xff] }
  0x1a   :  { %140 = vmatpush.msra.mxu1 %v131_v2  ;;  %773 = vmatpush.msra.mxu2 %v131_v2  ;;  %v125_v13 = vld [vmem:[#allocation3 + $0x38] sm:$0xff]  ;;  %v124_v15 = vld [vmem:[#allocation3 + $0x30] sm:$0xff]  ;;  %v1053_v16 = vld [vmem:[#allocation5 + $0x48] sm:$0xff] }
  0x1b   :  { %256 = vmatpush.msra.mxu3 %v1037_v8  ;;  %356 = vmatpush.msra.mxu0 %v1037_v8  ;;  %v123_v17 = vld [vmem:[#allocation3 + $0x28] sm:$0xff]  ;;  %v1057_v18 = vld [vmem:[#allocation5 + $0x40] sm:$0xff]  ;;  %v1061_v20 = vld [vmem:[#allocation5 + $0x38] sm:$0xff] }
  0x1c   :  { %141 = vmatpush.msra.mxu1 %v130_v3  ;;  %774 = vmatpush.msra.mxu2 %v130_v3  ;;  %v122_v19 = vld [vmem:[#allocation3 + $0x20] sm:$0xff]  ;;  %v121_v21 = vld [vmem:[#allocation3 + $0x18] sm:$0xff]  ;;  %v1065_v22 = vld [vmem:[#allocation5 + $0x30] sm:$0xff] }
  0x1d   :  { %257 = vmatpush.msra.mxu3 %v1041_v10  ;;  %357 = vmatpush.msra.mxu0 %v1041_v10  ;;  %v120_v23 = vld [vmem:[#allocation3 + $0x10] sm:$0xff]  ;;  %v1069_v24 = vld [vmem:[#allocation5 + $0x28] sm:$0xff]  ;;  %v1073_v26 = vld [vmem:[#allocation5 + $0x20] sm:$0xff] }
  0x1e   :  { %142 = vmatpush.msra.mxu1 %v129_v5  ;;  %775 = vmatpush.msra.mxu2 %v129_v5  ;;  %v119_v25 = vld [vmem:[#allocation3 + $0x8] sm:$0xff]  ;;  %v118_v27 = vld [vmem:[#allocation3] sm:$0xff]  ;;  %v1080_v29 = vld [vmem:[#allocation5 + $0x18] sm:$0xff] }
  0x1f   :  { %258 = vmatpush.msra.mxu3 %v1045_v12  ;;  %358 = vmatpush.msra.mxu0 %v1045_v12  ;;  %v110_v28 = vld [vmem:[%s1456_s0] sm:$0xff]  ;;  %v1084_v30 = vld [vmem:[#allocation5 + $0x10] sm:$0xff]  ;;  %v1089_v31 = vld [vmem:[#allocation5 + $0x8] sm:$0xff] }
  0x20   :  { %143 = vmatpush.msra.mxu1 %v128_v7  ;;  %776 = vmatpush.msra.mxu2 %v128_v7  ;;  %v1095_v32 = vld [vmem:[#allocation5] sm:$0xff]  ;;  %v111_v33 = vld [vmem:[%s1456_s0 + $0x8] sm:$0xff]  ;;  %v112_v34 = vld [vmem:[%s1456_s0 + $0x10] sm:$0xff] }
  0x21   :  { %259 = vmatpush.msra.mxu3 %v1049_v14  ;;  %359 = vmatpush.msra.mxu0 %v1049_v14  ;;  %v113_v35 = vld [vmem:[%s1456_s0 + $0x18] sm:$0xff]  ;;  %v114_v37 = vld [vmem:[%s1456_s0 + $0x20] sm:$0xff]  ;;  %v115_v38 = vld [vmem:[%s1456_s0 + $0x28] sm:$0xff] }
  0x22   :  { %144 = vmatpush.msra.mxu1 %v127_v9  ;;  %777 = vmatpush.msra.mxu2 %v127_v9  ;;  %v116_v39 = vld [vmem:[%s1456_s0 + $0x30] sm:$0xff]  ;;  %v117_v41 = vld [vmem:[%s1456_s0 + $0x38] sm:$0xff]  ;;  %v1217_v45 = vld [vmem:[%s1459_s3] ss:$0 sm:$0xff] }
  0x23   :  { %260 = vmatpush.msra.mxu3 %v1053_v16  ;;  %360 = vmatpush.msra.mxu0 %v1053_v16  ;;  %v425_v58 = vld [vmem:[#allocation7 + $0x78] sm:$0xff]  ;;  %v424_v59 = vld [vmem:[#allocation7 + $0x70] sm:$0xff]  ;;  %v423_v60 = vld [vmem:[#allocation7 + $0x68] sm:$0xff] }
  0x24   :  { %145 = vmatpush.msra.mxu1 %v126_v11  ;;  %778 = vmatpush.msra.mxu2 %v126_v11  ;;  %v422_v61 = vld [vmem:[#allocation7 + $0x60] sm:$0xff]  ;;  %v421_v62 = vld [vmem:[#allocation7 + $0x58] sm:$0xff]  ;;  %v420_v63 = vld [vmem:[#allocation7 + $0x50] sm:$0xff] }
  0x25   :  { %261 = vmatpush.msra.mxu3 %v1057_v18  ;;  %361 = vmatpush.msra.mxu0 %v1057_v18  ;;  %v419_v0 = vld [vmem:[#allocation7 + $0x48] sm:$0xff]  ;;  %v418_v5 = vld [vmem:[#allocation7 + $0x40] sm:$0xff]  ;;  %v416_v7 = vld [vmem:[#allocation7 + $0x30] sm:$0xff] }
  0x26   :  { %146 = vmatpush.msra.mxu1 %v125_v13  ;;  %779 = vmatpush.msra.mxu2 %v125_v13  ;;  %v414_v9 = vld [vmem:[#allocation7 + $0x20] sm:$0xff]  ;;  %v412_v11 = vld [vmem:[#allocation7 + $0x10] sm:$0xff] }
  0x27   :  { %262 = vmatpush.msra.mxu3 %v1061_v20  ;;  %362 = vmatpush.msra.mxu0 %v1061_v20  ;;  %v410_v13 = vld [vmem:[#allocation7] sm:$0xff] }
  0x28   :  { %147 = vmatpush.msra.mxu1 %v124_v15  ;;  %780 = vmatpush.msra.mxu2 %v124_v15 }
  0x29   :  { %263 = vmatpush.msra.mxu3 %v1065_v22  ;;  %363 = vmatpush.msra.mxu0 %v1065_v22 }
  0x2a   :  { %148 = vmatpush.msra.mxu1 %v123_v17  ;;  %781 = vmatpush.msra.mxu2 %v123_v17 }
  0x2b   :  { %264 = vmatpush.msra.mxu3 %v1069_v24  ;;  %364 = vmatpush.msra.mxu0 %v1069_v24 }
  0x2c   :  { %149 = vmatpush.msra.mxu1 %v122_v19  ;;  %782 = vmatpush.msra.mxu2 %v122_v19  ;;  %v1239_v19 = vld [vmem:[#allocation8 + $0x70] sm:$0xff] }
  0x2d   :  { %265 = vmatpush.msra.mxu3 %v1073_v26  ;;  %365 = vmatpush.msra.mxu0 %v1073_v26 }
  0x2e   :  { %150 = vmatpush.msra.mxu1 %v121_v21  ;;  %783 = vmatpush.msra.mxu2 %v121_v21  ;;  %v1249_v21 = vld [vmem:[#allocation8 + $0x60] sm:$0xff] }
  0x2f   :  { %266 = vmatpush.msra.mxu3 %v1080_v29  ;;  %366 = vmatpush.msra.mxu0 %v1080_v29 }
  0x30   :  { %151 = vmatpush.msra.mxu1 %v120_v23  ;;  %784 = vmatpush.msra.mxu2 %v120_v23  ;;  %v1262_v23 = vld [vmem:[#allocation8 + $0x50] sm:$0xff] }
  0x31   :  { %267 = vmatpush.msra.mxu3 %v1084_v30  ;;  %367 = vmatpush.msra.mxu0 %v1084_v30 }
  0x32   :  { %152 = vmatpush.msra.mxu1 %v119_v25  ;;  %785 = vmatpush.msra.mxu2 %v119_v25  ;;  %v1281_v25 = vld [vmem:[#allocation8 + $0x40] sm:$0xff] }
  0x33   :  { %268 = vmatpush.msra.mxu3 %v1089_v31  ;;  %368 = vmatpush.msra.mxu0 %v1089_v31 }
  0x34   :  { %153 = vmatpush.msra.mxu1 %v118_v27  ;;  %786 = vmatpush.msra.mxu2 %v118_v27  ;;  %v1290_v27 = vld [vmem:[#allocation8 + $0x30] sm:$0xff] }
  0x35   :  { %154 = vmatmul.f32.vlgmr.msra.gmra.mxu1 %v110_v28  ;;  %269 = vmatpush.msra.mxu3 %v1095_v32  ;;  %v1293_v28 = vld [vmem:[#allocation8 + $0x28] sm:$0xff] }
  0x36   :  { %229 = vmatpush.msrb.mxu2 %v1029_v4  ;;  %204 = vmatpush.msrb.mxu1 %v1029_v4 }
  0x37   :  { %329 = vmatpush.msrb.mxu3 %v1029_v4  ;;  %369 = vmatpush.msra.mxu0 %v1095_v32 }
  0x38   :  { %230 = vmatpush.msrb.mxu2 %v1033_v6  ;;  %205 = vmatpush.msrb.mxu1 %v1033_v6 }
  0x39   :  { %330 = vmatpush.msrb.mxu3 %v1033_v6  ;;  %166 = vmatmul.f32.vlgmr.msra.gmra.mxu2 %v114_v37 }
  0x3a   :  { %231 = vmatpush.msrb.mxu2 %v1037_v8  ;;  %206 = vmatpush.msrb.mxu1 %v1037_v8 }
  0x3b   :  { %331 = vmatpush.msrb.mxu3 %v1037_v8 }
  0x3c   :  { %232 = vmatpush.msrb.mxu2 %v1041_v10  ;;  %207 = vmatpush.msrb.mxu1 %v1041_v10 }
  0x3d   :  { %157 = vmatmul.f32.gmra.mxu1 %v111_v33  ;;  %332 = vmatpush.msrb.mxu3 %v1041_v10  ;;  %v1327_v33 = vld [vmem:[#allocation8] sm:$0xff] }
  0x3e   :  { %233 = vmatpush.msrb.mxu2 %v1045_v12  ;;  %208 = vmatpush.msrb.mxu1 %v1045_v12 }
  0x3f   :  { %333 = vmatpush.msrb.mxu3 %v1045_v12 }
  0x40   :  { %234 = vmatpush.msrb.mxu2 %v1049_v14  ;;  %209 = vmatpush.msrb.mxu1 %v1049_v14 }
  0x41   :  { %334 = vmatpush.msrb.mxu3 %v1049_v14  ;;  %169 = vmatmul.f32.gmra.mxu2 %v115_v38 }
  0x42   :  { %235 = vmatpush.msrb.mxu2 %v1053_v16  ;;  %210 = vmatpush.msrb.mxu1 %v1053_v16 }
  0x43   :  { %335 = vmatpush.msrb.mxu3 %v1053_v16 }
  0x44   :  { %236 = vmatpush.msrb.mxu2 %v1057_v18  ;;  %211 = vmatpush.msrb.mxu1 %v1057_v18 }
  0x45   :  { %160 = vmatmul.f32.gmra.mxu1 %v112_v34  ;;  %336 = vmatpush.msrb.mxu3 %v1057_v18 }
  0x46   :  { %237 = vmatpush.msrb.mxu2 %v1061_v20  ;;  %212 = vmatpush.msrb.mxu1 %v1061_v20 }
  0x47   :  { %337 = vmatpush.msrb.mxu3 %v1061_v20 }
  0x48   :  { %238 = vmatpush.msrb.mxu2 %v1065_v22  ;;  %213 = vmatpush.msrb.mxu1 %v1065_v22 }
  0x49   :  { %338 = vmatpush.msrb.mxu3 %v1065_v22  ;;  %172 = vmatmul.f32.gmra.mxu2 %v116_v39 }
  0x4a   :  { %239 = vmatpush.msrb.mxu2 %v1069_v24  ;;  %214 = vmatpush.msrb.mxu1 %v1069_v24 }
  0x4b   :  { %339 = vmatpush.msrb.mxu3 %v1069_v24 }
  0x4c   :  { %240 = vmatpush.msrb.mxu2 %v1073_v26  ;;  %215 = vmatpush.msrb.mxu1 %v1073_v26 }
  0x4d   :  { %163 = vmatmul.f32.gmra.mxu1 %v113_v35  ;;  %340 = vmatpush.msrb.mxu3 %v1073_v26 }
  0x4e   :  { %241 = vmatpush.msrb.mxu2 %v1080_v29  ;;  %216 = vmatpush.msrb.mxu1 %v1080_v29 }
  0x4f   :  { %341 = vmatpush.msrb.mxu3 %v1080_v29 }
  0x50   :  { %242 = vmatpush.msrb.mxu2 %v1084_v30  ;;  %217 = vmatpush.msrb.mxu1 %v1084_v30 }
  0x51   :  { %342 = vmatpush.msrb.mxu3 %v1084_v30  ;;  %175 = vmatmul.f32.gmra.mxu2 %v117_v41  ;;  %v1375_v41 = vld [vmem:[%s1462_s6] ss:$0 sm:$0xff] }
  0x52   :  { %243 = vmatpush.msrb.mxu2 %v1089_v31  ;;  %218 = vmatpush.msrb.mxu1 %v1089_v31 }
  0x53   :  { %343 = vmatpush.msrb.mxu3 %v1089_v31 }
  0x54   :  { %244 = vmatpush.msrb.mxu2 %v1095_v32  ;;  %219 = vmatpush.msrb.mxu1 %v1095_v32 }
  0x55   :  { %220 = vmatmul.f32.vlgmr.msrb.gmra.mxu1 %v963_v36  ;;  %344 = vmatpush.msrb.mxu3 %v1095_v32 }
  0x56   :  { %279 = vmatpush.msra.mxu1 %v1029_v4  ;;  %304 = vmatpush.msra.mxu2 %v1029_v4 }
  0x58   :  { %280 = vmatpush.msra.mxu1 %v1033_v6  ;;  %305 = vmatpush.msra.mxu2 %v1033_v6 }
  0x5a   :  { %281 = vmatpush.msra.mxu1 %v1037_v8  ;;  %306 = vmatpush.msra.mxu2 %v1037_v8 }
  0x5c   :  { %282 = vmatpush.msra.mxu1 %v1041_v10  ;;  %307 = vmatpush.msra.mxu2 %v1041_v10 }
  0x5e   :  { %283 = vmatpush.msra.mxu1 %v1045_v12  ;;  %308 = vmatpush.msra.mxu2 %v1045_v12 }
  0x60   :  { %284 = vmatpush.msra.mxu1 %v1049_v14  ;;  %309 = vmatpush.msra.mxu2 %v1049_v14 }
  0x62   :  { %285 = vmatpush.msra.mxu1 %v1053_v16  ;;  %310 = vmatpush.msra.mxu2 %v1053_v16 }
  0x64   :  { %286 = vmatpush.msra.mxu1 %v1057_v18  ;;  %311 = vmatpush.msra.mxu2 %v1057_v18 }
  0x66   :  { %287 = vmatpush.msra.mxu1 %v1061_v20  ;;  %312 = vmatpush.msra.mxu2 %v1061_v20 }
  0x68   :  { %288 = vmatpush.msra.mxu1 %v1065_v22  ;;  %313 = vmatpush.msra.mxu2 %v1065_v22 }
  0x6a   :  { %289 = vmatpush.msra.mxu1 %v1069_v24  ;;  %314 = vmatpush.msra.mxu2 %v1069_v24 }
  0x6c   :  { %290 = vmatpush.msra.mxu1 %v1073_v26  ;;  %315 = vmatpush.msra.mxu2 %v1073_v26 }
  0x6e   :  { %291 = vmatpush.msra.mxu1 %v1080_v29  ;;  %316 = vmatpush.msra.mxu2 %v1080_v29 }
  0x70   :  { %292 = vmatpush.msra.mxu1 %v1084_v30  ;;  %317 = vmatpush.msra.mxu2 %v1084_v30 }
  0x72   :  { %293 = vmatpush.msra.mxu1 %v1089_v31  ;;  %318 = vmatpush.msra.mxu2 %v1089_v31 }
  0x74   :  { %294 = vmatpush.msra.mxu1 %v1095_v32  ;;  %319 = vmatpush.msra.mxu2 %v1095_v32 }
  0x76   :  { %379 = vmatpush.msrb.mxu1 %v1029_v4 }
  0x78   :  { %380 = vmatpush.msrb.mxu1 %v1033_v6  ;;  %v417_v6 = vld [vmem:[#allocation7 + $0x38] sm:$0xff] }
  0x7a   :  { %381 = vmatpush.msrb.mxu1 %v1037_v8  ;;  %v415_v8 = vld [vmem:[#allocation7 + $0x28] sm:$0xff] }
  0x7c   :  { %382 = vmatpush.msrb.mxu1 %v1041_v10  ;;  %v413_v10 = vld [vmem:[#allocation7 + $0x18] sm:$0xff] }
  0x7e   :  { %383 = vmatpush.msrb.mxu1 %v1045_v12  ;;  %v411_v12 = vld [vmem:[#allocation7 + $0x8] sm:$0xff] }
  0x80   :  { %384 = vmatpush.msrb.mxu1 %v1049_v14 }
  0x82   :  { %385 = vmatpush.msrb.mxu1 %v1053_v16 }
  0x84   :  { %386 = vmatpush.msrb.mxu1 %v1057_v18  ;;  %v1237_v18 = vld [vmem:[#allocation8 + $0x78] sm:$0xff] }
  0x85   :  { %520 = vmatpush.msrb.mxu0 %v1237_v18 }
  0x86   :  { %387 = vmatpush.msrb.mxu1 %v1061_v20  ;;  %v1243_v20 = vld [vmem:[#allocation8 + $0x68] sm:$0xff] }
  0x87   :  { %521 = vmatpush.msrb.mxu0 %v1239_v19 }
  0x88   :  { %388 = vmatpush.msrb.mxu1 %v1065_v22  ;;  %v1255_v22 = vld [vmem:[#allocation8 + $0x58] sm:$0xff] }
  0x89   :  { %522 = vmatpush.msrb.mxu0 %v1243_v20 }
  0x8a   :  { %389 = vmatpush.msrb.mxu1 %v1069_v24  ;;  %v1267_v24 = vld [vmem:[#allocation8 + $0x48] sm:$0xff] }
  0x8b   :  { %523 = vmatpush.msrb.mxu0 %v1249_v21 }
  0x8c   :  { %390 = vmatpush.msrb.mxu1 %v1073_v26  ;;  %v1285_v26 = vld [vmem:[#allocation8 + $0x38] sm:$0xff] }
  0x8d   :  { %524 = vmatpush.msrb.mxu0 %v1255_v22 }
  0x8e   :  { %391 = vmatpush.msrb.mxu1 %v1080_v29  ;;  %v1303_v29 = vld [vmem:[#allocation8 + $0x20] sm:$0xff] }
  0x8f   :  { %525 = vmatpush.msrb.mxu0 %v1262_v23 }
  0x90   :  { %392 = vmatpush.msrb.mxu1 %v1084_v30  ;;  %v1309_v30 = vld [vmem:[#allocation8 + $0x18] sm:$0xff] }
  0x91   :  { %526 = vmatpush.msrb.mxu0 %v1267_v24 }
  0x92   :  { %393 = vmatpush.msrb.mxu1 %v1089_v31  ;;  %v1311_v31 = vld [vmem:[#allocation8 + $0x10] sm:$0xff] }
  0x93   :  { %527 = vmatpush.msrb.mxu0 %v1281_v25 }
  0x94   :  { %394 = vmatpush.msrb.mxu1 %v1095_v32  ;;  %v1317_v32 = vld [vmem:[#allocation8 + $0x8] sm:$0xff] }
  0x95   :  { %528 = vmatpush.msrb.mxu0 %v1285_v26 }
  0x97   :  { %529 = vmatpush.msrb.mxu0 %v1290_v27 }
  0x99   :  { %530 = vmatpush.msrb.mxu0 %v1293_v28 }
  0x9b   :  { %531 = vmatpush.msrb.mxu0 %v1303_v29 }
  0x9d   :  { %532 = vmatpush.msrb.mxu0 %v1309_v30 }
  0x9f   :  { %533 = vmatpush.msrb.mxu0 %v1311_v31 }
  0xa1   :  { %534 = vmatpush.msrb.mxu0 %v1317_v32 }
  0xa3   :  { %535 = vmatpush.msrb.mxu0 %v1327_v33 }
  0xb2   :  { %v155_v40 = vpop.f32.mrf.mxu1 }
  0xb3   :  { %v156_v46 = vadd.f32 %v1217_v45, %v155_v40 }
  0xba   :  { %v158_v42 = vpop.f32.mrf.mxu1 }
  0xbb   :  { %v159_v54 = vadd.f32 %v1217_v45, %v158_v42 }
  0xbc   :  { %v1223_v50 = vpop.f32.mrf.mxu2 }
  0xbd   :  { %v168_v34 = vadd.f32 %v1217_v45, %v1223_v50 }
  0xc2   :  { %v161_v43 = vpop.f32.mrf.mxu1 }
  0xc3   :  { %v162_v1 = vadd.f32 %v1217_v45, %v161_v43 }
  0xc4   :  { %v1225_v51 = vpop.f32.mrf.mxu2 }
  0xca   :  { %v164_v44 = vpop.f32.mrf.mxu1 }
  0xcb   :  { %v165_v14 = vadd.f32 %v1217_v45, %v164_v44 }
  0xcc   :  { %v1227_v52 = vpop.f32.mrf.mxu2 }
  0xd2   :  { %v221_v47 = vpop.f32.mrf.mxu1 }
  0xd3   :  { %v224_v48 = vadd.f32 %v221_v47, %v156_v46 }
  0xd4   :  { %v1229_v53 = vpop.f32.mrf.mxu2 }
  0xd5   :  { %798 = vtanh.f32 %v224_v48 }
  0xdb   :  { %v1220_v49 = vpop.eup %798 }
  0xdc   :  { %245 = vmatmul.f32.vlgmr.msrb.gmra.mxu2 %v1220_v49 }
  0xdd   :  { %430 = vmatpush.msrb.mxu2 %v425_v58 }
  0xdf   :  { %431 = vmatpush.msrb.mxu2 %v424_v59 }
  0xe1   :  { %432 = vmatpush.msrb.mxu2 %v423_v60  ;;  %v709_v60 = vld [vmem:[#allocation10 + $0x70] sm:$0xff] }
  0xe3   :  { %433 = vmatpush.msrb.mxu2 %v422_v61  ;;  %v708_v61 = vld [vmem:[#allocation10 + $0x68] sm:$0xff] }
  0xe5   :  { %434 = vmatpush.msrb.mxu2 %v421_v62  ;;  %v177_v62 = vadd.f32 %v1217_v45, %v1229_v53  ;;  %v702_v53 = vld [vmem:[#allocation10 + $0x38] sm:$0xff] }
  0xe7   :  { %435 = vmatpush.msrb.mxu2 %v420_v63 }
  0xe9   :  { %436 = vmatpush.msrb.mxu2 %v419_v0 }
  0xeb   :  { %437 = vmatpush.msrb.mxu2 %v418_v5 }
  0xed   :  { %438 = vmatpush.msrb.mxu2 %v417_v6 }
  0xef   :  { %439 = vmatpush.msrb.mxu2 %v416_v7  ;;  %v707_v7 = vld [vmem:[#allocation10 + $0x60] sm:$0xff] }
  0xf1   :  { %440 = vmatpush.msrb.mxu2 %v415_v8  ;;  %v706_v8 = vld [vmem:[#allocation10 + $0x58] sm:$0xff] }
  0xf3   :  { %441 = vmatpush.msrb.mxu2 %v414_v9  ;;  %v705_v9 = vld [vmem:[#allocation10 + $0x50] sm:$0xff] }
  0xf5   :  { %442 = vmatpush.msrb.mxu2 %v413_v10  ;;  %v704_v10 = vld [vmem:[#allocation10 + $0x48] sm:$0xff] }
  0xf7   :  { %443 = vmatpush.msrb.mxu2 %v412_v11  ;;  %v701_v11 = vld [vmem:[#allocation10 + $0x30] sm:$0xff] }
  0xf9   :  { %444 = vmatpush.msrb.mxu2 %v411_v12  ;;  %v700_v12 = vld [vmem:[#allocation10 + $0x28] sm:$0xff] }
  0xfb   :  { %445 = vmatpush.msrb.mxu2 %v410_v13  ;;  %v699_v13 = vld [vmem:[#allocation10 + $0x20] sm:$0xff] }
 0x15f   :  { %v246_v55 = vpop.f32.mrf.mxu2 }
 0x160   :  { %v249_v56 = vadd.f32 %v246_v55, %v159_v54 }
 0x162   :  { %800 = vtanh.f32 %v249_v56 }
 0x168   :  { %v1232_v57 = vpop.eup %800 }
 0x169   :  { %270 = vmatmul.f32.vlgmr.msra.gmra.mxu3 %v1232_v57 }
 0x16a   :  { %496 = vmatpush.msra.mxu3 %v1237_v18 }
 0x16c   :  { %497 = vmatpush.msra.mxu3 %v1239_v19 }
 0x16e   :  { %498 = vmatpush.msra.mxu3 %v1243_v20 }
 0x170   :  { %499 = vmatpush.msra.mxu3 %v1249_v21 }
 0x172   :  { %500 = vmatpush.msra.mxu3 %v1255_v22 }
 0x174   :  { %501 = vmatpush.msra.mxu3 %v1262_v23 }
 0x176   :  { %502 = vmatpush.msra.mxu3 %v1267_v24 }
 0x178   :  { %503 = vmatpush.msra.mxu3 %v1281_v25 }
 0x17a   :  { %504 = vmatpush.msra.mxu3 %v1285_v26 }
 0x17c   :  { %505 = vmatpush.msra.mxu3 %v1290_v27 }
 0x17e   :  { %506 = vmatpush.msra.mxu3 %v1293_v28 }
 0x180   :  { %507 = vmatpush.msra.mxu3 %v1303_v29 }
 0x182   :  { %508 = vmatpush.msra.mxu3 %v1309_v30 }
 0x184   :  { %509 = vmatpush.msra.mxu3 %v1311_v31 }
 0x186   :  { %510 = vmatpush.msra.mxu3 %v1317_v32 }
 0x188   :  { %511 = vmatpush.msra.mxu3 %v1327_v33 }
 0x1ec   :  { %v271_v2 = vpop.f32.mrf.mxu3 }
 0x1ed   :  { %v274_v3 = vadd.f32 %v271_v2, %v162_v1 }
 0x1ef   :  { %802 = vtanh.f32 %v274_v3 }
 0x1f5   :  { %v803_v4 = vpop.eup %802 }
 0x1f6   :  { %295 = vmatmul.f32.vlgmr.msra.gmra.mxu1 %v803_v4 }
 0x1f7   :  { %544 = vmatpush.msra.mxu1 %v1237_v18 }
 0x1f9   :  { %545 = vmatpush.msra.mxu1 %v1239_v19 }
 0x1fb   :  { %546 = vmatpush.msra.mxu1 %v1243_v20 }
 0x1fd   :  { %547 = vmatpush.msra.mxu1 %v1249_v21 }
 0x1ff   :  { %548 = vmatpush.msra.mxu1 %v1255_v22 }
 0x201   :  { %549 = vmatpush.msra.mxu1 %v1262_v23 }
 0x203   :  { %550 = vmatpush.msra.mxu1 %v1267_v24 }
 0x205   :  { %551 = vmatpush.msra.mxu1 %v1281_v25 }
 0x207   :  { %552 = vmatpush.msra.mxu1 %v1285_v26 }
 0x209   :  { %553 = vmatpush.msra.mxu1 %v1290_v27 }
 0x20b   :  { %554 = vmatpush.msra.mxu1 %v1293_v28 }
 0x20d   :  { %555 = vmatpush.msra.mxu1 %v1303_v29 }
 0x20f   :  { %556 = vmatpush.msra.mxu1 %v1309_v30 }
 0x211   :  { %557 = vmatpush.msra.mxu1 %v1311_v31 }
 0x213   :  { %558 = vmatpush.msra.mxu1 %v1317_v32 }
 0x215   :  { %559 = vmatpush.msra.mxu1 %v1327_v33 }
 0x273   :  { %v296_v15 = vpop.f32.mrf.mxu1 }
 0x274   :  { %v299_v16 = vadd.f32 %v296_v15, %v165_v14  ;;  %v698_v14 = vld [vmem:[#allocation10 + $0x18] sm:$0xff]  ;;  %v697_v15 = vld [vmem:[#allocation10 + $0x10] sm:$0xff] }
 0x276   :  { %804 = vtanh.f32 %v299_v16  ;;  %v696_v16 = vld [vmem:[#allocation10 + $0x8] sm:$0xff] }
 0x27c   :  { %v805_v17 = vpop.eup %804 }
 0x27d   :  { %320 = vmatmul.f32.vlgmr.msra.gmra.mxu2 %v805_v17 }
 0x27e   :  { %640 = vmatpush.msra.mxu2 %v1237_v18 }
 0x280   :  { %641 = vmatpush.msra.mxu2 %v1239_v19 }
 0x282   :  { %642 = vmatpush.msra.mxu2 %v1243_v20 }
 0x284   :  { %643 = vmatpush.msra.mxu2 %v1249_v21 }
 0x285   :  { %446 = vmatmul.f32.vlgmr.msrb.gmra.mxu2 %v1220_v49  ;;  %v174_v49 = vadd.f32 %v1217_v45, %v1227_v52  ;;  %v710_v52 = vld [vmem:[#allocation10 + $0x78] sm:$0xff] }
 0x286   :  { %644 = vmatpush.msra.mxu2 %v1255_v22 }
 0x288   :  { %645 = vmatpush.msra.mxu2 %v1262_v23 }
 0x28a   :  { %646 = vmatpush.msra.mxu2 %v1267_v24 }
 0x28c   :  { %647 = vmatpush.msra.mxu2 %v1281_v25 }
 0x28d   :  { %449 = vmatmul.f32.gmra.mxu2 %v1232_v57 }
 0x28e   :  { %648 = vmatpush.msra.mxu2 %v1285_v26 }
 0x290   :  { %649 = vmatpush.msra.mxu2 %v1290_v27 }
 0x292   :  { %650 = vmatpush.msra.mxu2 %v1293_v28 }
 0x294   :  { %651 = vmatpush.msra.mxu2 %v1303_v29 }
 0x295   :  { %452 = vmatmul.f32.gmra.mxu2 %v803_v4 }
 0x296   :  { %652 = vmatpush.msra.mxu2 %v1309_v30 }
 0x298   :  { %653 = vmatpush.msra.mxu2 %v1311_v31 }
 0x29a   :  { %654 = vmatpush.msra.mxu2 %v1317_v32 }
 0x29c   :  { %655 = vmatpush.msra.mxu2 %v1327_v33 }
 0x29d   :  { %455 = vmatmul.f32.gmra.mxu2 %v805_v17  ;;  %v695_v17 = vld [vmem:[#allocation10] sm:$0xff] }
 0x300   :  { %v321_v35 = vpop.f32.mrf.mxu2 }
 0x301   :  { %v324_v37 = vadd.f32 %v321_v35, %v168_v34 }
 0x303   :  { %806 = vtanh.f32 %v324_v37 }
 0x308   :  { %v447_v42 = vpop.f32.mrf.mxu2 }
 0x309   :  { %v807_v38 = vpop.eup %806  ;;  %v448_v43 = vadd.f32 %v1375_v41, %v447_v42 }
 0x30a   :  { %345 = vmatmul.f32.vlgmr.msrb.gmra.mxu3 %v807_v38  ;;  %458 = vmatmul.f32.gmra.mxu2 %v807_v38 }
 0x30b   :  { %568 = vmatpush.msrb.mxu3 %v1237_v18 }
 0x30d   :  { %569 = vmatpush.msrb.mxu3 %v1239_v19 }
 0x30f   :  { %570 = vmatpush.msrb.mxu3 %v1243_v20 }
 0x310   :  { %v450_v54 = vpop.f32.mrf.mxu2 }
 0x311   :  { %571 = vmatpush.msrb.mxu3 %v1249_v21  ;;  %v451_v55 = vadd.f32 %v1375_v41, %v450_v54 }
 0x312   :  { %512 = vmatmul.f32.vlgmr.msra.gmra.mxu3 %v963_v36  ;;  %v171_v36 = vadd.f32 %v1217_v45, %v1225_v51  ;;  %v703_v45 = vld [vmem:[#allocation10 + $0x40] sm:$0xff] }
 0x313   :  { %572 = vmatpush.msrb.mxu3 %v1255_v22 }
 0x315   :  { %573 = vmatpush.msrb.mxu3 %v1262_v23 }
 0x317   :  { %574 = vmatpush.msrb.mxu3 %v1267_v24 }
 0x318   :  { %v453_v1 = vpop.f32.mrf.mxu2 }
 0x319   :  { %575 = vmatpush.msrb.mxu3 %v1281_v25  ;;  %v454_v2 = vadd.f32 %v1375_v41, %v453_v1 }
 0x31b   :  { %576 = vmatpush.msrb.mxu3 %v1285_v26 }
 0x31d   :  { %577 = vmatpush.msrb.mxu3 %v1290_v27 }
 0x31f   :  { %578 = vmatpush.msrb.mxu3 %v1293_v28 }
 0x321   :  { %579 = vmatpush.msrb.mxu3 %v1303_v29 }
 0x323   :  { %580 = vmatpush.msrb.mxu3 %v1309_v30 }
 0x325   :  { %581 = vmatpush.msrb.mxu3 %v1311_v31 }
 0x327   :  { %582 = vmatpush.msrb.mxu3 %v1317_v32 }
 0x329   :  { %583 = vmatpush.msrb.mxu3 %v1327_v33 }
 0x32b   :  { %664 = vmatpush.msra.mxu3 %v1237_v18 }
 0x32d   :  { %665 = vmatpush.msra.mxu3 %v1239_v19 }
 0x32f   :  { %666 = vmatpush.msra.mxu3 %v1243_v20 }
 0x331   :  { %667 = vmatpush.msra.mxu3 %v1249_v21 }
 0x333   :  { %668 = vmatpush.msra.mxu3 %v1255_v22 }
 0x335   :  { %669 = vmatpush.msra.mxu3 %v1262_v23 }
 0x337   :  { %670 = vmatpush.msra.mxu3 %v1267_v24 }
 0x339   :  { %671 = vmatpush.msra.mxu3 %v1281_v25 }
 0x33b   :  { %672 = vmatpush.msra.mxu3 %v1285_v26 }
 0x33d   :  { %673 = vmatpush.msra.mxu3 %v1290_v27 }
 0x33f   :  { %674 = vmatpush.msra.mxu3 %v1293_v28 }
 0x341   :  { %675 = vmatpush.msra.mxu3 %v1303_v29 }
 0x343   :  { %676 = vmatpush.msra.mxu3 %v1309_v30 }
 0x345   :  { %677 = vmatpush.msra.mxu3 %v1311_v31 }
 0x347   :  { %678 = vmatpush.msra.mxu3 %v1317_v32 }
 0x349   :  { %679 = vmatpush.msra.mxu3 %v1327_v33 }
 0x38d   :  { %v346_v39 = vpop.f32.mrf.mxu3 }
 0x38e   :  { %v349_v40 = vadd.f32 %v346_v39, %v171_v36 }
 0x390   :  { %808 = vtanh.f32 %v349_v40 }
 0x395   :  { %v513_v44 = vpop.f32.mrf.mxu3 }
 0x396   :  { %v809_v46 = vpop.eup %808  ;;  %v516_v47 = vadd.f32 %v513_v44, %v448_v43 }
 0x397   :  { %370 = vmatmul.f32.vlgmr.msra.gmra.mxu0 %v809_v46  ;;  %461 = vmatmul.f32.gmra.mxu2 %v809_v46 }
 0x398   :  { %810 = vtanh.f32 %v516_v47  ;;  %592 = vmatpush.msra.mxu0 %v1237_v18 }
 0x39a   :  { %593 = vmatpush.msra.mxu0 %v1239_v19 }
 0x39c   :  { %594 = vmatpush.msra.mxu0 %v1243_v20 }
 0x39e   :  { %v1381_v48 = vpop.eup %810  ;;  %595 = vmatpush.msra.mxu0 %v1249_v21 }
 0x39f   :  { %536 = vmatmul.f32.vlgmr.msrb.gmra.mxu0 %v1381_v48 }
 0x3a0   :  { %596 = vmatpush.msra.mxu0 %v1255_v22 }
 0x3a2   :  { %597 = vmatpush.msra.mxu0 %v1262_v23 }
 0x3a4   :  { %598 = vmatpush.msra.mxu0 %v1267_v24 }
 0x3a6   :  { %599 = vmatpush.msra.mxu0 %v1281_v25 }
 0x3a8   :  { %600 = vmatpush.msra.mxu0 %v1285_v26 }
 0x3aa   :  { %601 = vmatpush.msra.mxu0 %v1290_v27 }
 0x3ac   :  { %602 = vmatpush.msra.mxu0 %v1293_v28 }
 0x3ae   :  { %603 = vmatpush.msra.mxu0 %v1303_v29 }
 0x3b0   :  { %604 = vmatpush.msra.mxu0 %v1309_v30 }
 0x3b2   :  { %605 = vmatpush.msra.mxu0 %v1311_v31 }
 0x3b4   :  { %606 = vmatpush.msra.mxu0 %v1317_v32 }
 0x3b6   :  { %607 = vmatpush.msra.mxu0 %v1327_v33 }
 0x3b8   :  { %715 = vmatpush.msrb.mxu0 %v710_v52 }
 0x3ba   :  { %716 = vmatpush.msrb.mxu0 %v709_v60 }
 0x3bc   :  { %717 = vmatpush.msrb.mxu0 %v708_v61 }
 0x3be   :  { %718 = vmatpush.msrb.mxu0 %v707_v7 }
 0x3c0   :  { %719 = vmatpush.msrb.mxu0 %v706_v8 }
 0x3c2   :  { %720 = vmatpush.msrb.mxu0 %v705_v9 }
 0x3c4   :  { %721 = vmatpush.msrb.mxu0 %v704_v10 }
 0x3c6   :  { %722 = vmatpush.msrb.mxu0 %v703_v45 }
 0x3c8   :  { %723 = vmatpush.msrb.mxu0 %v702_v53 }
 0x3ca   :  { %724 = vmatpush.msrb.mxu0 %v701_v11 }
 0x3cc   :  { %725 = vmatpush.msrb.mxu0 %v700_v12 }
 0x3ce   :  { %726 = vmatpush.msrb.mxu0 %v699_v13 }
 0x3d0   :  { %727 = vmatpush.msrb.mxu0 %v698_v14 }
 0x3d2   :  { %728 = vmatpush.msrb.mxu0 %v697_v15 }
 0x3d4   :  { %729 = vmatpush.msrb.mxu0 %v696_v16 }
 0x3d6   :  { %730 = vmatpush.msrb.mxu0 %v695_v17 }
 0x414   :  { %v371_v50 = vpop.f32.mrf.mxu0 }
 0x415   :  { %v374_v51 = vadd.f32 %v371_v50, %v174_v49 }
 0x417   :  { %812 = vtanh.f32 %v374_v51 }
 0x41c   :  { %v537_v56 = vpop.f32.mrf.mxu0 }
 0x41d   :  { %v813_v57 = vpop.eup %812  ;;  %v540_v58 = vadd.f32 %v537_v56, %v451_v55 }
 0x41e   :  { %395 = vmatmul.f32.vlgmr.msrb.gmra.mxu1 %v813_v57  ;;  %464 = vmatmul.f32.gmra.mxu2 %v813_v57 }
 0x41f   :  { %814 = vtanh.f32 %v540_v58  ;;  %616 = vmatpush.msrb.mxu1 %v1237_v18  ;;  %v456_v18 = vpop.f32.mrf.mxu2 }
 0x421   :  { %617 = vmatpush.msrb.mxu1 %v1239_v19  ;;  %v457_v19 = vadd.f32 %v1375_v41, %v456_v18 }
 0x423   :  { %618 = vmatpush.msrb.mxu1 %v1243_v20 }
 0x425   :  { %v1403_v59 = vpop.eup %814  ;;  %619 = vmatpush.msrb.mxu1 %v1249_v21 }
 0x426   :  { %560 = vmatmul.f32.vlgmr.msra.gmra.mxu1 %v1403_v59 }
 0x427   :  { %620 = vmatpush.msrb.mxu1 %v1255_v22 }
 0x429   :  { %621 = vmatpush.msrb.mxu1 %v1262_v23  ;;  %v459_v23 = vpop.f32.mrf.mxu2 }
 0x42b   :  { %622 = vmatpush.msrb.mxu1 %v1267_v24  ;;  %v460_v24 = vadd.f32 %v1375_v41, %v459_v23 }
 0x42d   :  { %623 = vmatpush.msrb.mxu1 %v1281_v25 }
 0x42f   :  { %624 = vmatpush.msrb.mxu1 %v1285_v26 }
 0x431   :  { %625 = vmatpush.msrb.mxu1 %v1290_v27  ;;  %v797_v27 = vld [vmem:[%s1464_s8] ss:$0 sm:$0xff]  ;;  %v462_v38 = vpop.f32.mrf.mxu2 }
 0x432   :  { %v463_v36 = vadd.f32 %v1375_v41, %v462_v38 }
 0x433   :  { %626 = vmatpush.msrb.mxu1 %v1293_v28 }
 0x435   :  { %627 = vmatpush.msrb.mxu1 %v1303_v29 }
 0x437   :  { %628 = vmatpush.msrb.mxu1 %v1309_v30 }
 0x439   :  { %629 = vmatpush.msrb.mxu1 %v1311_v31 }
 0x43b   :  { %630 = vmatpush.msrb.mxu1 %v1317_v32 }
 0x43d   :  { %631 = vmatpush.msrb.mxu1 %v1327_v33 }
 0x49b   :  { %v396_v63 = vpop.f32.mrf.mxu1 }
 0x49c   :  { %v399_v0 = vadd.f32 %v396_v63, %v177_v62 }
 0x49e   :  { %816 = vtanh.f32 %v399_v0 }
 0x4a1   :  { %v465_v46 = vpop.f32.mrf.mxu2 }
 0x4a2   :  { %v466_v50 = vadd.f32 %v1375_v41, %v465_v46 }
 0x4a3   :  { %v561_v3 = vpop.f32.mrf.mxu1 }
 0x4a4   :  { %v817_v4 = vpop.eup %816  ;;  %v564_v5 = vadd.f32 %v561_v3, %v454_v2 }
 0x4a5   :  { %467 = vmatmul.f32.gmra.mxu2 %v817_v4 }
 0x4a6   :  { %818 = vtanh.f32 %v564_v5 }
 0x4ac   :  { %v819_v6 = vpop.eup %818 }
 0x4ad   :  { %584 = vmatmul.f32.vlgmr.msrb.gmra.mxu3 %v819_v6 }
 0x528   :  { %v468_v47 = vpop.f32.mrf.mxu2 }
 0x529   :  { %v469_v58 = vadd.f32 %v1375_v41, %v468_v47 }
 0x530   :  { %v585_v20 = vpop.f32.mrf.mxu3 }
 0x531   :  { %v588_v21 = vadd.f32 %v585_v20, %v457_v19 }
 0x533   :  { %820 = vtanh.f32 %v588_v21 }
 0x539   :  { %v821_v22 = vpop.eup %820 }
 0x53a   :  { %608 = vmatmul.f32.vlgmr.msra.gmra.mxu0 %v821_v22 }
 0x542   :  { %731 = vmatmul.f32.vlgmr.msrb.gmra.mxu0 %v1381_v48 }
 0x54a   :  { %734 = vmatmul.f32.gmra.mxu0 %v1403_v59 }
 0x552   :  { %737 = vmatmul.f32.gmra.mxu0 %v819_v6 }
 0x55a   :  { %740 = vmatmul.f32.gmra.mxu0 %v821_v22 }
 0x5b7   :  { %v609_v25 = vpop.f32.mrf.mxu0 }
 0x5b8   :  { %v612_v26 = vadd.f32 %v609_v25, %v460_v24 }
 0x5ba   :  { %822 = vtanh.f32 %v612_v26 }
 0x5bf   :  { %v732_v28 = vpop.f32.mrf.mxu0 }
 0x5c0   :  { %v823_v29 = vpop.eup %822  ;;  %v733_v30 = vadd.f32 %v797_v27, %v732_v28 }
 0x5c1   :  { %632 = vmatmul.f32.vlgmr.msrb.gmra.mxu1 %v823_v29  ;;  %743 = vmatmul.f32.gmra.mxu0 %v823_v29 }
 0x5c2   :  { %756 = vst [vmem:[%s1465_s9] sm:$0xff] %v733_v30 }
 0x5c7   :  { %v735_v31 = vpop.f32.mrf.mxu0 }
 0x5c8   :  { %v736_v32 = vadd.f32 %v797_v27, %v735_v31 }
 0x5ca   :  { %757 = vst [vmem:[%s1465_s9 + $0x8] sm:$0xff] %v736_v32 }
 0x5cf   :  { %v738_v33 = vpop.f32.mrf.mxu0 }
 0x5d0   :  { %v739_v34 = vadd.f32 %v797_v27, %v738_v33 }
 0x5d2   :  { %758 = vst [vmem:[%s1465_s9 + $0x10] sm:$0xff] %v739_v34 }
 0x5d7   :  { %v741_v35 = vpop.f32.mrf.mxu0 }
 0x5d8   :  { %v742_v37 = vadd.f32 %v797_v27, %v741_v35 }
 0x5da   :  { %759 = vst [vmem:[%s1465_s9 + $0x18] sm:$0xff] %v742_v37 }
 0x63e   :  { %v633_v39 = vpop.f32.mrf.mxu1  ;;  %v744_v40 = vpop.f32.mrf.mxu0 }
 0x63f   :  { %v636_v42 = vadd.f32 %v633_v39, %v463_v36  ;;  %v745_v43 = vadd.f32 %v797_v27, %v744_v40 }
 0x641   :  { %824 = vtanh.f32 %v636_v42  ;;  %760 = vst [vmem:[%s1465_s9 + $0x20] sm:$0xff] %v745_v43 }
 0x647   :  { %v825_v44 = vpop.eup %824 }
 0x648   :  { %656 = vmatmul.f32.vlgmr.msra.gmra.mxu2 %v825_v44  ;;  %746 = vmatmul.f32.gmra.mxu0 %v825_v44 }
 0x6c5   :  { %v747_v48 = vpop.f32.mrf.mxu0 }
 0x6c6   :  { %v748_v49 = vadd.f32 %v797_v27, %v747_v48 }
 0x6c8   :  { %761 = vst [vmem:[%s1465_s9 + $0x28] sm:$0xff] %v748_v49 }
 0x6cb   :  { %v657_v51 = vpop.f32.mrf.mxu2 }
 0x6cc   :  { %v660_v54 = vadd.f32 %v657_v51, %v466_v50 }
 0x6ce   :  { %826 = vtanh.f32 %v660_v54 }
 0x6d4   :  { %v827_v55 = vpop.eup %826 }
 0x6d5   :  { %680 = vmatmul.f32.vlgmr.msra.gmra.mxu3 %v827_v55  ;;  %749 = vmatmul.f32.gmra.mxu0 %v827_v55 }
 0x752   :  { %v750_v56 = vpop.f32.mrf.mxu0 }
 0x753   :  { %v751_v57 = vadd.f32 %v797_v27, %v750_v56 }
 0x755   :  { %762 = vst [vmem:[%s1465_s9 + $0x30] sm:$0xff] %v751_v57 }
 0x758   :  { %v681_v59 = vpop.f32.mrf.mxu3 }
 0x759   :  { %v684_v52 = vadd.f32 %v681_v59, %v469_v58 }
 0x75b   :  { %828 = vtanh.f32 %v684_v52 }
 0x761   :  { %v829_v60 = vpop.eup %828 }
 0x762   :  { %752 = vmatmul.f32.gmra.mxu0 %v829_v60 }
 0x7df   :  { %v753_v61 = vpop.f32.mrf.mxu0 }
 0x7e0   :  { %v754_v62 = vadd.f32 %v797_v27, %v753_v61 }
 0x7e2   :  { %763 = vst [vmem:[%s1465_s9 + $0x38] sm:$0xff] %v754_v62 }
 0x7e3   :  { %768 = vsyncpa [#allocation4], 1 }
 0x7e4   :  { %769 = vsyncpa [#allocation6], 1 }
 0x7e5   :  { %770 = vsyncpa [#allocation9], 1 }

</bundles_post_ra>
